<compile_context>
chip_gen: v6e
topology: v6e:2x2x1
jax: 0.10.0
libtpu: 0.0.40
codegen_flags: <defaults>
</compile_context>

<pallas_src>
import functools

import jax
import jax.numpy as jnp
from jax.experimental import pallas as pl
from jax.experimental.pallas import tpu as pltpu


# packed-row indices in the (8, W) row-parameter tile
_ROW_B_ATTN = 0   # folded encoder+attention bias
_ROW_G1 = 1       # LayerNorm1 gamma
_ROW_BE1 = 2      # LayerNorm1 beta
_ROW_B1 = 3       # FFN linear1 bias
_ROW_B2 = 4       # FFN linear2 bias
_ROW_BC = 5       # folded classifier bias (includes LN2 beta)


def clip_decoder_kernel(
    x_ref,       # (B, IMG)    f32  flattened image (IMG lane-dense)
    q_ref,       # (G*B, Dp)   f32  group queries pre-repeated (row g*B+b = q[g])
    wa_ref,      # (IMG, Dp)   bf16 folded encoder @ Wv^T @ Wo^T
    w1_ref,      # (Dp, Fp)    bf16 FFN linear1
    w2_ref,      # (Fp, Dp)    bf16 FFN linear2
    wc_ref,      # (Dp, NCp)   bf16 classifier with LN2 gamma folded in
    rows_ref,    # (8, W)      f32  packed 1-row params (biases / LN1 affine)
    out_ref,     # (B, NCp)    f32
    *, d_true, g_groups, batch,
):
    GB, Dp = q_ref.shape
    Fp = w1_ref.shape[1]
    NCp = wc_ref.shape[1]
    B, G = batch, g_groups
    inv_d = 1.0 / d_true

    # --- packed row parameters: static slices of the single (8, W) tile ---
    b_attn = rows_ref[_ROW_B_ATTN:_ROW_B_ATTN + 1, :Dp]
    g1 = rows_ref[_ROW_G1:_ROW_G1 + 1, :Dp]
    be1 = rows_ref[_ROW_BE1:_ROW_BE1 + 1, :Dp]
    b1 = rows_ref[_ROW_B1:_ROW_B1 + 1, :Fp]
    b2 = rows_ref[_ROW_B2:_ROW_B2 + 1, :Dp]
    bc = rows_ref[_ROW_BC:_ROW_BC + 1, :NCp]

    # --- fused frozen encoder + cross attention (KV length == 1 -> softmax==1,
    #     so attn == out_proj(v_proj(encode(x))), all folded into one matmul) ---
    attn = (
        jnp.dot(x_ref[...].astype(jnp.bfloat16), wa_ref[...],
                preferred_element_type=jnp.float32)
        + b_attn
    )  # (B, Dp) f32

    # --- residual add over the G group queries: G static B-row slice adds ---
    q = q_ref[...]
    x = jnp.concatenate(
        [q[g * B:(g + 1) * B, :] + attn for g in range(G)], axis=0
    )  # (G*B, Dp)

    # LayerNorm statistics over the true D.  Padded lanes of the inputs are
    # exactly zero (zero-padded weights/biases/queries), so plain sums give the
    # exact true-D mean and E[x^2]; no masks or iota needed.
    def ln_normalize(y):
        mu = jnp.sum(y, axis=-1, keepdims=True) * inv_d
        var = jnp.sum(y * y, axis=-1, keepdims=True) * inv_d - mu * mu
        return (y - mu) * jax.lax.rsqrt(var + 1e-5)

    # LN1 with affine (gamma/beta zero-padded -> padded lanes stay exactly 0)
    x = ln_normalize(x) * g1 + be1

    # --- feed-forward network (bf16 weights, f32 accumulate) ---
    h = (
        jnp.dot(x.astype(jnp.bfloat16), w1_ref[...],
                preferred_element_type=jnp.float32)
        + b1
    )
    h = jnp.maximum(h, 0.0)
    ff = (
        jnp.dot(h.astype(jnp.bfloat16), w2_ref[...],
                preferred_element_type=jnp.float32)
        + b2
    )

    # LN2 affine is folded into the classifier -> affine-free normalization.
    xn = ln_normalize(x + ff)  # (G*B, Dp); padded lanes hit zero rows of wc

    # --- mean over the G group queries: sum of G static B-row slices ---
    acc = xn[0:B, :]
    for g in range(1, G):
        acc = acc + xn[g * B:(g + 1) * B, :]
    agg = acc * (1.0 / G)  # (B, Dp)

    # --- classifier (LN2 gamma folded into wc, LN2 beta folded into bc) ---
    out_ref[...] = (
        jnp.dot(agg.astype(jnp.bfloat16), wc_ref[...],
                preferred_element_type=jnp.float32)
        + bc
    )


def init_params(key, *, img_dim, D, G, F, NC):
    ks = jax.random.split(key, 16)
    s = 0.02
    return dict(
        w_enc=jax.random.normal(ks[0], (img_dim, D), jnp.float32) * s,
        b_enc=jax.random.normal(ks[1], (D,), jnp.float32) * s,
        group_queries=jax.random.normal(ks[2], (G, D), jnp.float32),
        in_proj_w=jax.random.normal(ks[3], (3 * D, D), jnp.float32) * s,
        in_proj_b=jax.random.normal(ks[4], (3 * D,), jnp.float32) * s,
        out_proj_w=jax.random.normal(ks[5], (D, D), jnp.float32) * s,
        out_proj_b=jax.random.normal(ks[6], (D,), jnp.float32) * s,
        ln1_g=1.0 + 0.1 * jax.random.normal(ks[7], (D,), jnp.float32),
        ln1_b=0.1 * jax.random.normal(ks[8], (D,), jnp.float32),
        ff_w1=jax.random.normal(ks[9], (F, D), jnp.float32) * s,   # torch (out, in)
        ff_b1=jax.random.normal(ks[10], (F,), jnp.float32) * s,
        ff_w2=jax.random.normal(ks[11], (D, F), jnp.float32) * s,
        ff_b2=jax.random.normal(ks[12], (D,), jnp.float32) * s,
        ln2_g=1.0 + 0.1 * jax.random.normal(ks[13], (D,), jnp.float32),
        ln2_b=0.1 * jax.random.normal(ks[14], (D,), jnp.float32),
        cls_w=jax.random.normal(ks[15], (NC, D), jnp.float32) * s,
        cls_b=jnp.zeros((NC,), jnp.float32),
    )


def _pad2(a, rows, cols):
    return jnp.pad(a, ((0, rows - a.shape[0]), (0, cols - a.shape[1])))


def _pad_row(v, cols):
    return jnp.pad(v, (0, cols - v.shape[0]))


def prepare_kernel_params(p, *, D, F, NC, lane=128):
    """One-time frozen-weight prep: folds + lane padding + bf16 weight cast.

    Done ONCE outside the per-call path (decoder weights are fixed at
    inference), so the folds cost nothing per forward.
    Invariant: every padded lane/row of every weight/bias is exactly zero so
    the in-kernel LayerNorm statistics stay exact over the true D.
    """
    rnd = lambda n: ((n + lane - 1) // lane) * lane
    Dp, Fp, NCp = rnd(D), rnd(F), rnd(NC)
    W = max(Dp, Fp, NCp)
    img_dim = p["w_enc"].shape[0]

    # attention fold (valid because KV seq length == 1, eval mode):
    #   out_proj(v_proj(feats)) == feats @ (Wv^T @ Wo^T) + (bv @ Wo^T + bo)
    Wv = p["in_proj_w"][2 * D:3 * D]          # torch (out, in) value slice
    bv = p["in_proj_b"][2 * D:3 * D]
    Wo = p["out_proj_w"]
    bo = p["out_proj_b"]
    w_vo = Wv.T @ Wo.T
    b_vo = bv @ Wo.T + bo

    # frozen encoder proxy folded into the attention fold
    w_attn = p["w_enc"] @ w_vo                # (img_dim, D)
    b_attn = p["b_enc"] @ w_vo + b_vo         # (D,)

    # LayerNorm2 affine folded into the classifier
    cls_wt = p["cls_w"].T                     # (D, NC)
    w_cls = p["ln2_g"][:, None] * cls_wt
    b_cls = p["ln2_b"] @ cls_wt + p["cls_b"]

    rows = jnp.stack([
        _pad_row(b_attn, W),
        _pad_row(p["ln1_g"], W),
        _pad_row(p["ln1_b"], W),
        _pad_row(p["ff_b1"], W),
        _pad_row(p["ff_b2"], W),
        _pad_row(b_cls, W),
        jnp.zeros((W,), jnp.float32),
        jnp.zeros((W,), jnp.float32),
    ])  # (8, W) f32 — one VMEM tile for all row params

    return dict(
        group_queries=_pad2(p["group_queries"], p["group_queries"].shape[0], Dp),
        w_attn=_pad2(w_attn, img_dim, Dp).astype(jnp.bfloat16),
        w1=_pad2(p["ff_w1"].T, Dp, Fp).astype(jnp.bfloat16),
        w2=_pad2(p["ff_w2"].T, Fp, Dp).astype(jnp.bfloat16),
        w_cls=_pad2(w_cls, Dp, NCp).astype(jnp.bfloat16),
        rows=rows,
    )


def clip_decoder_forward(x, kp, *, D, G, NC):
    B = x.shape[0]
    x_flat = x.reshape(B, -1)
    NCp = kp["w_cls"].shape[1]

    # group queries pre-repeated to (G*B, Dp): row g*B+b == q[g]
    q_rep = jnp.repeat(kp["group_queries"], B, axis=0)

    inputs = (x_flat, q_rep, kp["w_attn"], kp["w1"], kp["w2"], kp["w_cls"],
              kp["rows"])
    out = pl.pallas_call(
        functools.partial(clip_decoder_kernel, d_true=D, g_groups=G, batch=B),
        out_shape=jax.ShapeDtypeStruct((B, NCp), jnp.float32),
        in_specs=[pl.BlockSpec(memory_space=pltpu.MemorySpace.VMEM)] * len(inputs),
        out_specs=pl.BlockSpec(memory_space=pltpu.MemorySpace.VMEM),
    )(*inputs)
    return out[:, :NC]


def torch_style_reference(x, p, *, G, D, H, F, NC):
    """Pure-JAX f32 reference mirroring the PyTorch module (full multi-head attn)."""
    B = x.shape[0]
    feats = x.reshape(B, -1) @ p["w_enc"] + p["b_enc"]           # (B, D)
    kv = feats[None]                                             # (1, B, D)
    q = jnp.broadcast_to(p["group_queries"][:, None, :], (G, B, D))
    Wq, Wk, Wv = jnp.split(p["in_proj_w"], 3, axis=0)
    bq, bk, bv = jnp.split(p["in_proj_b"], 3, axis=0)
    Q = q @ Wq.T + bq
    K = kv @ Wk.T + bk
    V = kv @ Wv.T + bv
    hd = D // H

    def to_heads(t):  # (L, B, D) -> (B*H, L, hd), torch MHA layout
        L = t.shape[0]
        return t.reshape(L, B * H, hd).transpose(1, 0, 2)

    Qh, Kh, Vh = to_heads(Q), to_heads(K), to_heads(V)
    scores = (Qh @ Kh.transpose(0, 2, 1)) / jnp.sqrt(jnp.float32(hd))
    w = jax.nn.softmax(scores, axis=-1)
    attn = (w @ Vh).transpose(1, 0, 2).reshape(G, B, D)
    attn = attn @ p["out_proj_w"].T + p["out_proj_b"]

    def ln(y, g, b):
        mu = y.mean(-1, keepdims=True)
        var = ((y - mu) ** 2).mean(-1, keepdims=True)
        return (y - mu) / jnp.sqrt(var + 1e-5) * g + b

    xq = ln(q + attn, p["ln1_g"], p["ln1_b"])
    ff = jnp.maximum(xq @ p["ff_w1"].T + p["ff_b1"], 0.0) @ p["ff_w2"].T + p["ff_b2"]
    xq = ln(xq + ff, p["ln2_g"], p["ln2_b"])
    agg = xq.mean(axis=0)                                        # (B, D)
    return agg @ p["cls_w"].T + p["cls_b"]                       # (B, NC)


if __name__ == "__main__":
    # small shapes consistent with the module (num_layers=1 default)
    B, Cimg, Himg, Wimg = 2, 3, 16, 16
    D, G, F, NC, H = 32, 4, 64, 5, 8   # embed_dim, num_groups, ff_dim, classes, heads

    x = jax.random.normal(jax.random.PRNGKey(0), (B, Cimg, Himg, Wimg), jnp.float32)
    params = init_params(jax.random.PRNGKey(1), img_dim=Cimg * Himg * Wimg,
                         D=D, G=G, F=F, NC=NC)

    # one-time frozen-weight preparation (folds + lane padding + bf16), not per-call
    kparams = prepare_kernel_params(params, D=D, F=F, NC=NC)

    logits = clip_decoder_forward(x, kparams, D=D, G=G, NC=NC)
    logits = jax.block_until_ready(logits)

    ref = torch_style_reference(x, params, G=G, D=D, H=H, F=F, NC=NC)
    assert logits.shape == (B, NC)
    # bf16 matmul operands (f32 accumulate) -> compare at bf16-appropriate tolerance
    assert jnp.allclose(logits, ref, atol=2e-2, rtol=2e-2), (logits, ref)
    print("KERNEL_OK")
</pallas_src>

<mosaic_0001>
module attributes {stable_mosaic.version = 11 : i64} {
  func.func @clip_decoder_kernel(%arg0: memref<2x768xf32, #tpu.memory_space<vmem>>, %arg1: memref<8x128xf32, #tpu.memory_space<vmem>>, %arg2: memref<768x128xbf16, #tpu.memory_space<vmem>>, %arg3: memref<128x128xbf16, #tpu.memory_space<vmem>>, %arg4: memref<128x128xbf16, #tpu.memory_space<vmem>>, %arg5: memref<128x128xbf16, #tpu.memory_space<vmem>>, %arg6: memref<8x128xf32, #tpu.memory_space<vmem>>, %arg7: memref<2x128xf32, #tpu.memory_space<vmem>>) attributes {dimension_semantics = [], scalar_prefetch = 0 : i64, scratch_operands = 0 : i64, tpu.core_type = #tpu.core_type<tc>} {
    %c0 = arith.constant 0 : index
    %c0_0 = arith.constant 0 : index
    %0 = vector.load %arg6[%c0, %c0_0] : memref<8x128xf32, #tpu.memory_space<vmem>>, vector<1x128xf32>
    %c1 = arith.constant 1 : index
    %c0_1 = arith.constant 0 : index
    %1 = vector.load %arg6[%c1, %c0_1] : memref<8x128xf32, #tpu.memory_space<vmem>>, vector<1x128xf32>
    %c2 = arith.constant 2 : index
    %c0_2 = arith.constant 0 : index
    %2 = vector.load %arg6[%c2, %c0_2] : memref<8x128xf32, #tpu.memory_space<vmem>>, vector<1x128xf32>
    %c3 = arith.constant 3 : index
    %c0_3 = arith.constant 0 : index
    %3 = vector.load %arg6[%c3, %c0_3] : memref<8x128xf32, #tpu.memory_space<vmem>>, vector<1x128xf32>
    %c4 = arith.constant 4 : index
    %c0_4 = arith.constant 0 : index
    %4 = vector.load %arg6[%c4, %c0_4] : memref<8x128xf32, #tpu.memory_space<vmem>>, vector<1x128xf32>
    %c5 = arith.constant 5 : index
    %c0_5 = arith.constant 0 : index
    %5 = vector.load %arg6[%c5, %c0_5] : memref<8x128xf32, #tpu.memory_space<vmem>>, vector<1x128xf32>
    %c0_6 = arith.constant 0 : index
    %c0_7 = arith.constant 0 : index
    %6 = vector.load %arg0[%c0_6, %c0_7] : memref<2x768xf32, #tpu.memory_space<vmem>>, vector<2x768xf32>
    %7 = arith.truncf %6 : vector<2x768xf32> to vector<2x768xbf16>
    %c0_8 = arith.constant 0 : index
    %c0_9 = arith.constant 0 : index
    %8 = vector.load %arg2[%c0_8, %c0_9] : memref<768x128xbf16, #tpu.memory_space<vmem>>, vector<768x128xbf16>
    %cst = arith.constant dense<0.000000e+00> : vector<2x128xf32>
    %9 = tpu.matmul %7, %8, %cst {dimension_numbers = #tpu.dot_dimension_numbers<[1], [0], [0], [1], [0, 0, 1, 1], [], []>} : vector<2x768xbf16>, vector<768x128xbf16>, vector<2x128xf32> -> vector<2x128xf32>
    %10 = vector.broadcast %0 : vector<1x128xf32> to vector<2x128xf32>
    %11 = arith.addf %9, %10 : vector<2x128xf32>
    %c0_10 = arith.constant 0 : index
    %c0_11 = arith.constant 0 : index
    %12 = vector.load %arg1[%c0_10, %c0_11] : memref<8x128xf32, #tpu.memory_space<vmem>>, vector<8x128xf32>
    %13 = vector.extract_strided_slice %12 {offsets = [0, 0], sizes = [2, 128], strides = [1, 1]} : vector<8x128xf32> to vector<2x128xf32>
    %14 = arith.addf %13, %11 : vector<2x128xf32>
    %15 = vector.extract_strided_slice %12 {offsets = [2, 0], sizes = [2, 128], strides = [1, 1]} : vector<8x128xf32> to vector<2x128xf32>
    %16 = arith.addf %15, %11 : vector<2x128xf32>
    %17 = vector.extract_strided_slice %12 {offsets = [4, 0], sizes = [2, 128], strides = [1, 1]} : vector<8x128xf32> to vector<2x128xf32>
    %18 = arith.addf %17, %11 : vector<2x128xf32>
    %19 = vector.extract_strided_slice %12 {offsets = [6, 0], sizes = [2, 128], strides = [1, 1]} : vector<8x128xf32> to vector<2x128xf32>
    %20 = arith.addf %19, %11 : vector<2x128xf32>
    %21 = tpu.concatenate %14, %16, %18, %20 in 0 : vector<2x128xf32>, vector<2x128xf32>, vector<2x128xf32>, vector<2x128xf32> -> vector<8x128xf32>
    %cst_12 = arith.constant dense<0.000000e+00> : vector<8xf32>
    %22 = vector.multi_reduction <add>, %21, %cst_12 [1] : vector<8x128xf32> to vector<8xf32>
    %23 = vector.shape_cast %22 : vector<8xf32> to vector<8x1xf32>
    %cst_13 = arith.constant 3.125000e-02 : f32
    %24 = vector.broadcast %cst_13 : f32 to vector<8x1xf32>
    %25 = arith.mulf %23, %24 : vector<8x1xf32>
    %26 = arith.mulf %21, %21 : vector<8x128xf32>
    %cst_14 = arith.constant dense<0.000000e+00> : vector<8xf32>
    %27 = vector.multi_reduction <add>, %26, %cst_14 [1] : vector<8x128xf32> to vector<8xf32>
    %28 = vector.shape_cast %27 : vector<8xf32> to vector<8x1xf32>
    %cst_15 = arith.constant 3.125000e-02 : f32
    %29 = vector.broadcast %cst_15 : f32 to vector<8x1xf32>
    %30 = arith.mulf %28, %29 : vector<8x1xf32>
    %31 = arith.mulf %25, %25 : vector<8x1xf32>
    %32 = arith.subf %30, %31 : vector<8x1xf32>
    %33 = vector.broadcast %25 : vector<8x1xf32> to vector<8x128xf32>
    %34 = arith.subf %21, %33 : vector<8x128xf32>
    %cst_16 = arith.constant 9.99999974E-6 : f32
    %35 = vector.broadcast %cst_16 : f32 to vector<8x1xf32>
    %36 = arith.addf %32, %35 : vector<8x1xf32>
    %37 = math.rsqrt %36 : vector<8x1xf32>
    %38 = vector.broadcast %37 : vector<8x1xf32> to vector<8x128xf32>
    %39 = arith.mulf %34, %38 : vector<8x128xf32>
    %40 = vector.broadcast %1 : vector<1x128xf32> to vector<8x128xf32>
    %41 = arith.mulf %39, %40 : vector<8x128xf32>
    %42 = vector.broadcast %2 : vector<1x128xf32> to vector<8x128xf32>
    %43 = arith.addf %41, %42 : vector<8x128xf32>
    %44 = arith.truncf %43 : vector<8x128xf32> to vector<8x128xbf16>
    %c0_17 = arith.constant 0 : index
    %c0_18 = arith.constant 0 : index
    %45 = vector.load %arg3[%c0_17, %c0_18] : memref<128x128xbf16, #tpu.memory_space<vmem>>, vector<128x128xbf16>
    %cst_19 = arith.constant dense<0.000000e+00> : vector<8x128xf32>
    %46 = tpu.matmul %44, %45, %cst_19 {dimension_numbers = #tpu.dot_dimension_numbers<[1], [0], [0], [1], [0, 0, 1, 1], [], []>} : vector<8x128xbf16>, vector<128x128xbf16>, vector<8x128xf32> -> vector<8x128xf32>
    %47 = vector.broadcast %3 : vector<1x128xf32> to vector<8x128xf32>
    %48 = arith.addf %46, %47 : vector<8x128xf32>
    %cst_20 = arith.constant 0.000000e+00 : f32
    %49 = vector.broadcast %cst_20 : f32 to vector<8x128xf32>
    %50 = arith.maximumf %48, %49 : vector<8x128xf32>
    %51 = arith.truncf %50 : vector<8x128xf32> to vector<8x128xbf16>
    %c0_21 = arith.constant 0 : index
    %c0_22 = arith.constant 0 : index
    %52 = vector.load %arg4[%c0_21, %c0_22] : memref<128x128xbf16, #tpu.memory_space<vmem>>, vector<128x128xbf16>
    %cst_23 = arith.constant dense<0.000000e+00> : vector<8x128xf32>
    %53 = tpu.matmul %51, %52, %cst_23 {dimension_numbers = #tpu.dot_dimension_numbers<[1], [0], [0], [1], [0, 0, 1, 1], [], []>} : vector<8x128xbf16>, vector<128x128xbf16>, vector<8x128xf32> -> vector<8x128xf32>
    %54 = vector.broadcast %4 : vector<1x128xf32> to vector<8x128xf32>
    %55 = arith.addf %53, %54 : vector<8x128xf32>
    %56 = arith.addf %43, %55 : vector<8x128xf32>
    %cst_24 = arith.constant dense<0.000000e+00> : vector<8xf32>
    %57 = vector.multi_reduction <add>, %56, %cst_24 [1] : vector<8x128xf32> to vector<8xf32>
    %58 = vector.shape_cast %57 : vector<8xf32> to vector<8x1xf32>
    %cst_25 = arith.constant 3.125000e-02 : f32
    %59 = vector.broadcast %cst_25 : f32 to vector<8x1xf32>
    %60 = arith.mulf %58, %59 : vector<8x1xf32>
    %61 = arith.mulf %56, %56 : vector<8x128xf32>
    %cst_26 = arith.constant dense<0.000000e+00> : vector<8xf32>
    %62 = vector.multi_reduction <add>, %61, %cst_26 [1] : vector<8x128xf32> to vector<8xf32>
    %63 = vector.shape_cast %62 : vector<8xf32> to vector<8x1xf32>
    %cst_27 = arith.constant 3.125000e-02 : f32
    %64 = vector.broadcast %cst_27 : f32 to vector<8x1xf32>
    %65 = arith.mulf %63, %64 : vector<8x1xf32>
    %66 = arith.mulf %60, %60 : vector<8x1xf32>
    %67 = arith.subf %65, %66 : vector<8x1xf32>
    %68 = vector.broadcast %60 : vector<8x1xf32> to vector<8x128xf32>
    %69 = arith.subf %56, %68 : vector<8x128xf32>
    %cst_28 = arith.constant 9.99999974E-6 : f32
    %70 = vector.broadcast %cst_28 : f32 to vector<8x1xf32>
    %71 = arith.addf %67, %70 : vector<8x1xf32>
    %72 = math.rsqrt %71 : vector<8x1xf32>
    %73 = vector.broadcast %72 : vector<8x1xf32> to vector<8x128xf32>
    %74 = arith.mulf %69, %73 : vector<8x128xf32>
    %75 = vector.extract_strided_slice %74 {offsets = [0, 0], sizes = [2, 128], strides = [1, 1]} : vector<8x128xf32> to vector<2x128xf32>
    %76 = vector.extract_strided_slice %74 {offsets = [2, 0], sizes = [2, 128], strides = [1, 1]} : vector<8x128xf32> to vector<2x128xf32>
    %77 = arith.addf %75, %76 : vector<2x128xf32>
    %78 = vector.extract_strided_slice %74 {offsets = [4, 0], sizes = [2, 128], strides = [1, 1]} : vector<8x128xf32> to vector<2x128xf32>
    %79 = arith.addf %77, %78 : vector<2x128xf32>
    %80 = vector.extract_strided_slice %74 {offsets = [6, 0], sizes = [2, 128], strides = [1, 1]} : vector<8x128xf32> to vector<2x128xf32>
    %81 = arith.addf %79, %80 : vector<2x128xf32>
    %cst_29 = arith.constant 2.500000e-01 : f32
    %82 = vector.broadcast %cst_29 : f32 to vector<2x128xf32>
    %83 = arith.mulf %81, %82 : vector<2x128xf32>
    %84 = arith.truncf %83 : vector<2x128xf32> to vector<2x128xbf16>
    %c0_30 = arith.constant 0 : index
    %c0_31 = arith.constant 0 : index
    %85 = vector.load %arg5[%c0_30, %c0_31] : memref<128x128xbf16, #tpu.memory_space<vmem>>, vector<128x128xbf16>
    %cst_32 = arith.constant dense<0.000000e+00> : vector<2x128xf32>
    %86 = tpu.matmul %84, %85, %cst_32 {dimension_numbers = #tpu.dot_dimension_numbers<[1], [0], [0], [1], [0, 0, 1, 1], [], []>} : vector<2x128xbf16>, vector<128x128xbf16>, vector<2x128xf32> -> vector<2x128xf32>
    %87 = vector.broadcast %5 : vector<1x128xf32> to vector<2x128xf32>
    %88 = arith.addf %86, %87 : vector<2x128xf32>
    %c0_33 = arith.constant 0 : index
    %c0_34 = arith.constant 0 : index
    %89 = vector.load %arg7[%c0_33, %c0_34] : memref<2x128xf32, #tpu.memory_space<vmem>>, vector<2x128xf32>
    tpu.vector_store %arg7[%c0_33, %c0_34], %88 {strides = array<i32>} : memref<2x128xf32, #tpu.memory_space<vmem>>, vector<2x128xf32>,
    return
  }
}

</mosaic_0001>

<bundles_post_ra>
// kernel: tpu_custom_call.1
= control target key start
LH: loop header
LB: loop body
LE: loop exit
PB: predicated region body
PF: predicated region fallthrough
CT: control target
= control target key end

     0   :  { %12 = vsyncpa [#allocation3], 0  ;;  %s1684_s0 = inlined_call_operand.hbm [shape: f32[2,768], index: 0, kind: input, shape index: {}]   ;;  %s1685_s1 = inlined_call_operand.hbm [shape: f32[8,128], index: 1, kind: input, shape index: {}]   ;;  %s1686_s2 = inlined_call_operand.hbm [shape: bf16[768,128], index: 2, kind: input, shape index: {}]   ;;  %s1687_s3 = inlined_call_operand.hbm [shape: bf16[128,128], index: 3, kind: input, shape index: {}]   ;;  %s1688_s4 = inlined_call_operand.hbm [shape: bf16[128,128], index: 4, kind: input, shape index: {}]   ;;  %s1689_s5 = inlined_call_operand.hbm [shape: bf16[128,128], index: 5, kind: input, shape index: {}]   ;;  %s1690_s6 = inlined_call_operand.vmem [shape: f32[8,128], index: 6, kind: input, shape index: {}]   ;;  %s1691_s7 = inlined_call_operand.hbm [shape: f32[2,128], index: 7, kind: output, shape index: {}]  }
   0x1   :  { %13 = vsyncpa [#allocation6], 0 }
   0x2   :  { %14 = vsyncpa [#allocation9], 0 }
   0x3   :  { %15 = vsyncpa [#allocation12], 0 }
   0x4   :  { %16 = vsyncpa [#allocation4], 0  ;;  %s1545_s24 = smov [#allocation5]  }
   0x5   :  { %s33_s25 = sshll.u32 %s1545_s24, 4  ;;  %s34_s25 = int_to_ptr.vmem [resolvable:$true] %s33_s25 }
   0x6   :  { %s1403_s26 = scalar_lea.vmem %s34_s25, 128  ;;  %p1408_p1 = scmp.lt.s32.totalorder %s34_s25, %s34_s25 }
   0x7   :  { %p1404_p0 = scmp.ne.s32.totalorder %s34_s25, %s1403_s26  ;;  %p1409_p2 = scmp.lt.s32.totalorder %s1403_s26, %s1403_s26 }
   0x9   :  { %p1410_p3 = por %p1409_p2, %p1408_p1 }
   0xb   :  { %p1411_p4 = pnand %p1410_p3, %p1404_p0 }
   0xd   :  { %1414 = shalt.err (!%p1411_p4)
}
   0xe   :  { %36 = dma.hbm_to_vmem [thread:$0]  %s1685_s1, 128, %s34_s25, [#allocation6]  }
   0xf   :  { %s1546_s29 = smov [#allocation8]   ;;  %s1547_s8 = smov [#allocation2]  }
  0x10   :  { %s54_s30 = sshll.u32 %s1546_s29, 4  ;;  %s23_s9 = sshll.u32 %s1547_s8, 4  ;;  %s55_s30 = int_to_ptr.vmem [resolvable:$true] %s54_s30  ;;  %s24_s9 = int_to_ptr.vmem [resolvable:$true] %s23_s9 }
  0x11   :  { %s1423_s10 = scalar_lea.vmem %s55_s30, 1024  ;;  %p1428_p6 = scmp.lt.s32.totalorder %s55_s30, %s55_s30 }
  0x12   :  { %p1424_p5 = scmp.ne.s32.totalorder %s55_s30, %s1423_s10  ;;  %p1429_p7 = scmp.lt.s32.totalorder %s1423_s10, %s1423_s10 }
  0x14   :  { %p1430_p8 = por %p1429_p7, %p1428_p6 }
  0x16   :  { %p1431_p9 = pnand %p1430_p8, %p1424_p5 }
  0x18   :  { %1434 = shalt.err (!%p1431_p9)
}
  0x19   :  { %s1548_s11 = smov 64   ;;  %s1549_s12 = smov 4  }
  0x1a   :  { %60 = dma.hbm_to_vmem [thread:$0]  %s1687_s3, 1024, %s55_s30, [#allocation9], %s1548_s11, %s1548_s11, %s1549_s12  }
  0x1b   :  { %s1443_s1 = scalar_lea.vmem %s24_s9, 192  ;;  %p1448_p11 = scmp.lt.s32.totalorder %s24_s9, %s24_s9 }
  0x1c   :  { %p1444_p10 = scmp.ne.s32.totalorder %s24_s9, %s1443_s1  ;;  %p1449_p12 = scmp.lt.s32.totalorder %s1443_s1, %s1443_s1 }
  0x1e   :  { %p1450_p13 = por %p1449_p12, %p1448_p11 }
  0x20   :  { %p1451_p0 = pnand %p1450_p13, %p1444_p10 }
  0x22   :  { %1454 = shalt.err (!%p1451_p0)
}
  0x23   :  { %26 = dma.hbm_to_vmem [thread:$0]  %s1684_s0, 192, %s24_s9, [#allocation3]  }
  0x24   :  { %s1550_s17 = smov [#allocation7]   ;;  %s1551_s19 = smov [#allocation10]  }
  0x25   :  { %s42_s18 = sshll.u32 %s1550_s17, 4  ;;  %s66_s20 = sshll.u32 %s1551_s19, 4  ;;  %s43_s18 = int_to_ptr.vmem [resolvable:$true] %s42_s18  ;;  %s67_s20 = int_to_ptr.vmem [resolvable:$true] %s66_s20 }
  0x26   :  { %s1463_s21 = scalar_lea.vmem %s43_s18, 6144  ;;  %p1468_p2 = scmp.lt.s32.totalorder %s43_s18, %s43_s18 }
  0x27   :  { %p1464_p1 = scmp.ne.s32.totalorder %s43_s18, %s1463_s21  ;;  %p1469_p3 = scmp.lt.s32.totalorder %s1463_s21, %s1463_s21 }
  0x29   :  { %p1470_p4 = por %p1469_p3, %p1468_p2 }
  0x2b   :  { %p1471_p5 = pnand %p1470_p4, %p1464_p1 }
  0x2d   :  { %1474 = shalt.err (!%p1471_p5)
}
  0x2e   :  { %48 = dma.hbm_to_vmem [thread:$0]  %s1686_s2, 6144, %s43_s18, [#allocation6], %s1548_s11, %s1548_s11, %s1549_s12  }
  0x2f   :  { %s1483_s0 = scalar_lea.vmem %s67_s20, 1024  ;;  %p1488_p7 = scmp.lt.s32.totalorder %s67_s20, %s67_s20 }
  0x30   :  { %p1484_p6 = scmp.ne.s32.totalorder %s67_s20, %s1483_s0  ;;  %p1489_p8 = scmp.lt.s32.totalorder %s1483_s0, %s1483_s0 }
  0x32   :  { %p1490_p9 = por %p1489_p8, %p1488_p7 }
  0x34   :  { %p1491_p10 = pnand %p1490_p9, %p1484_p6 }
  0x36   :  { %1494 = shalt.err (!%p1491_p10)
}
  0x37   :  { %72 = dma.hbm_to_vmem [thread:$0]  %s1688_s4, 1024, %s67_s20, [#allocation9], %s1548_s11, %s1548_s11, %s1549_s12  }
  0x38   :  { %s1552_s25 = smov [#allocation11]  }
  0x39   :  { %s78_s26 = sshll.u32 %s1552_s25, 4  ;;  %s79_s26 = int_to_ptr.vmem [resolvable:$true] %s78_s26 }
  0x3a   :  { %s1503_s27 = scalar_lea.vmem %s79_s26, 1024  ;;  %p1508_p12 = scmp.lt.s32.totalorder %s79_s26, %s79_s26 }
  0x3b   :  { %p1504_p11 = scmp.ne.s32.totalorder %s79_s26, %s1503_s27  ;;  %p1509_p13 = scmp.lt.s32.totalorder %s1503_s27, %s1503_s27 }
  0x3d   :  { %p1510_p0 = por %p1509_p13, %p1508_p12 }
  0x3f   :  { %p1511_p1 = pnand %p1510_p0, %p1504_p11 }
  0x41   :  { %1514 = shalt.err (!%p1511_p1)
}
  0x42   :  { %84 = dma.hbm_to_vmem [thread:$0]  %s1689_s5, 1024, %s79_s26, [#allocation12], %s1548_s11, %s1548_s11, %s1549_s12  }
  0x43   :  { %1535 = dma.done.wait [#allocation3], 192  }
  0x44   :  { %1536 = vsyncadd [#allocation3], 4294967104 }
  0x45   :  { %1537 = dma.done.wait [#allocation6], 6272  }
  0x46   :  { %1538 = vsyncadd [#allocation6], 4294961024 }
  0x47   :  { %1539 = dma.done.wait [#allocation9], 2048  }
  0x48   :  { %1540 = vsyncadd [#allocation9], 4294965248 }
  0x49   :  { %1541 = dma.done.wait [#allocation12], 1024  }
  0x4a   :  { %1542 = vsyncadd [#allocation12], 4294966272  ;;  %v1318_v0 = vld [vmem:[#allocation7 + $0x78] sm:$0xff]   ;;  %v1322_v4 = vld [vmem:[#allocation7 + $0x70] sm:$0xff]   ;;  %v1553_v21 = vmov 1983009808   ;;  %v120_v23 = vlaneseq }
  0x4b   :  { %v1319_v1 = vld [vmem:[#allocation7 + $0x38] sm:$0xff]   ;;  %1153 = vmatprep.subr.bf16.mxu0 %v1318_v0  ;;  %v1323_v5 = vld [vmem:[#allocation7 + $0x30] sm:$0xff]   ;;  %v1326_v8 = vld [vmem:[#allocation7 + $0x68] sm:$0xff]   ;;  %v118_v22 = vunpack.c.l.s4 %v1553_v21  ;;  %vm673_vm0 = vcmask 1041408   ;;  %vm675_vm1 = vcmask 1043456   ;;  %vm677_vm2 = vcmask 1045504  }
  0x4c   :  { %v1320_v2 = vld [vmem:[#allocation7 + $0xf8] sm:$0xff]   ;;  %1154 = vmatpush3.bf16.msra.mxu0 %v1319_v1  ;;  %v1324_v6 = vld [vmem:[#allocation7 + $0xf0] sm:$0xff]   ;;  %v1327_v9 = vld [vmem:[#allocation7 + $0x28] sm:$0xff]   ;;  %v121_v29 = vshrl.u32 %v120_v23, 7  ;;  %vm1555_vm3 = vmmov 0   ;;  %s1556_s15 = smov [#allocation13]  }
  0x4d   :  { %v1321_v3 = vld [vmem:[#allocation7 + $0xb8] sm:$0xff]   ;;  %1175 = vmatprep.subr.bf16.mxu1 %v1320_v2  ;;  %1155 = vmatprep.subr.bf16.mxu0 %v1322_v4  ;;  %v1325_v7 = vld [vmem:[#allocation7 + $0xb0] sm:$0xff]   ;;  %v1328_v10 = vld [vmem:[#allocation7 + $0xe8] sm:$0xff]   ;;  %v119_v28 = vunpack.c.0.s8 %v118_v22  ;;  %s1062_s16 = sshll.u32 %s1556_s15, 4  ;;  %s1063_s16 = int_to_ptr.vmem [resolvable:$true] %s1062_s16 }
  0x4e   :  { %1176 = vmatpush3.bf16.msra.mxu1 %v1321_v3  ;;  %v1329_v11 = vld [vmem:[#allocation7 + $0xa8] sm:$0xff]   ;;  %v1330_v12 = vld [vmem:[#allocation7 + $0x60] sm:$0xff]   ;;  %v1334_v16 = vld [vmem:[#allocation7 + $0x58] sm:$0xff]   ;;  %s1515_s17 = scalar_lea.vmem %s1063_s16, 32  ;;  %p1520_p3 = scmp.lt.s32.totalorder %s1063_s16, %s1063_s16 }
  0x4f   :  { %1177 = vmatprep.subr.bf16.mxu1 %v1324_v6  ;;  %v1331_v13 = vld [vmem:[#allocation7 + $0x20] sm:$0xff]   ;;  %v1335_v17 = vld [vmem:[#allocation7 + $0x18] sm:$0xff]   ;;  %v1338_v20 = vld [vmem:[#allocation7 + $0x50] sm:$0xff]   ;;  %v122_v34 = vsub.s32 %v119_v28, %v121_v29  ;;  %p1516_p2 = scmp.ne.s32.totalorder %s1063_s16, %s1515_s17  ;;  %p1521_p4 = scmp.lt.s32.totalorder %s1515_s17, %s1515_s17 }
  0x50   :  { %1156 = vmatpush3.bf16.msra.mxu0 %v1323_v5  ;;  %v1332_v14 = vld [vmem:[#allocation7 + $0xe0] sm:$0xff]   ;;  %v1336_v18 = vld [vmem:[#allocation7 + $0xd8] sm:$0xff]   ;;  %v1339_v24 = vld [vmem:[#allocation7 + $0x10] sm:$0xff]  }
  0x51   :  { %1157 = vmatprep.subr.bf16.mxu0 %v1326_v8  ;;  %v1333_v15 = vld [vmem:[#allocation7 + $0xa0] sm:$0xff]   ;;  %v1337_v19 = vld [vmem:[#allocation7 + $0x98] sm:$0xff]   ;;  %v1340_v25 = vld [vmem:[#allocation7 + $0xd0] sm:$0xff]   ;;  %p1522_p5 = por %p1521_p4, %p1520_p3 }
  0x52   :  { %1178 = vmatpush3.bf16.msra.mxu1 %v1325_v7  ;;  %v1341_v26 = vld [vmem:[#allocation7 + $0x90] sm:$0xff]   ;;  %v1342_v27 = vld [vmem:[#allocation7 + $0x48] sm:$0xff]   ;;  %v1346_v33 = vld [vmem:[#allocation7 + $0x40] sm:$0xff]  }
  0x53   :  { %1179 = vmatprep.subr.bf16.mxu1 %v1328_v10  ;;  %v1343_v30 = vld [vmem:[#allocation7 + $0x8] sm:$0xff]   ;;  %v1347_v35 = vld [vmem:[#allocation7] sm:$0xff]   ;;  %v1350_v41 = vld [vmem:[#allocation7 + $0x178] sm:$0xff]   ;;  %p1523_p6 = pnand %p1522_p5, %p1516_p2 }
  0x54   :  { %1158 = vmatpush3.bf16.msra.mxu0 %v1327_v9  ;;  %v1344_v31 = vld [vmem:[#allocation7 + $0xc8] sm:$0xff]   ;;  %v1348_v36 = vld [vmem:[#allocation7 + $0xc0] sm:$0xff]   ;;  %v1352_v47 = vld [vmem:[#allocation7 + $0x138] sm:$0xff]  }
  0x55   :  { %1159 = vmatprep.subr.bf16.mxu0 %v1330_v12  ;;  %v1345_v32 = vld [vmem:[#allocation7 + $0x88] sm:$0xff]   ;;  %v1349_v39 = vld [vmem:[#allocation7 + $0x80] sm:$0xff]   ;;  %v1353_v49 = vld [vmem:[#allocation7 + $0x170] sm:$0xff]  }
  0x56   :  { %1180 = vmatpush3.bf16.msra.mxu1 %v1329_v11  ;;  %v112_v37 = vld [vmem:[#allocation2] sm:$0xff]  ;;  %v1357_v54 = vld [vmem:[#allocation7 + $0x160] sm:$0xff]   ;;  %v1359_v56 = vld [vmem:[#allocation7 + $0x158] sm:$0xff]  }
  0x57   :  { %1181 = vmatprep.subr.bf16.mxu1 %v1332_v14  ;;  %v123_v38 = vrot.slane %v112_v37, %v122_v34  ;;  %v116_v40 = vcombine.high %v112_v37, %v112_v37  ;;  %v1354_v51 = vld [vmem:[#allocation7 + $0x130] sm:$0xff]   ;;  %v1355_v52 = vld [vmem:[#allocation7 + $0x168] sm:$0xff]   ;;  %v1358_v55 = vld [vmem:[#allocation7 + $0x120] sm:$0xff]  }
  0x58   :  { %1160 = vmatpush3.bf16.msra.mxu0 %v1331_v13  ;;  %v1356_v53 = vld [vmem:[#allocation7 + $0x128] sm:$0xff]   ;;  %v1074_v57 = vld.sshfl [vmem:[#allocation2 + $0x8] sm:$0x33 pattern:$0x76325410]  ;;  %v1360_v59 = vld [vmem:[#allocation7 + $0x118] sm:$0xff]  }
  0x59   :  { %1161 = vmatprep.subr.bf16.mxu0 %v1334_v16  ;;  %v131_v42 = vcombine.high %v123_v38, %v123_v38  ;;  %v130_v43 = vrot.slane %v116_v40, %v122_v34  ;;  %v147_v44 = vpack.c.bf16 %v123_v38, %v123_v38  ;;  %v140_v58 = vcombine.high %v1074_v57, %v1074_v57  ;;  %v1361_v60 = vld [vmem:[#allocation7 + $0x150] sm:$0xff]   ;;  %v1363_v63 = vld [vmem:[#allocation7 + $0x148] sm:$0xff]   ;;  %v1365_v1 = vld [vmem:[#allocation7 + $0x140] sm:$0xff]  }
  0x5a   :  { %1182 = vmatpush3.bf16.msra.mxu1 %v1333_v15  ;;  %v1362_v62 = vld [vmem:[#allocation7 + $0x110] sm:$0xff]   ;;  %v1364_v0 = vld [vmem:[#allocation7 + $0x108] sm:$0xff]   ;;  %v1366_v2 = vld [vmem:[#allocation7 + $0x100] sm:$0xff]   ;;  %v151_v3 = vpack.c.bf16 %v1074_v57, %v1074_v57 }
  0x5b   :  { %1183 = vmatprep.subr.bf16.mxu1 %v1336_v18  ;;  %v148_v45 = vpack.c.bf16 %v131_v42, %v131_v42  ;;  %v132_v46 = vcombine.high %v130_v43, %v130_v43  ;;  %v149_v48 = vpack.c.bf16 %v130_v43, %v130_v43  ;;  %v152_v61 = vpack.c.bf16 %v140_v58, %v140_v58  ;;  %v1075_v13 = vld [vmem:[%s1690_s6] ss:$0 sm:$0xff]  ;;  %v661_v23 = vld [vmem:[#allocation5] sm:$0xff]  ;;  %v1368_v37 = vld [vmem:[#allocation8 + $0x30] sm:$0xff]  }
  0x5c   :  { %1162 = vmatpush3.bf16.msra.mxu0 %v1335_v17  ;;  %v1369_v38 = vld [vmem:[#allocation8 + $0x28] sm:$0xff]   ;;  %v1371_v40 = vld [vmem:[#allocation8 + $0x18] sm:$0xff]   ;;  %v1374_v43 = vld [vmem:[#allocation8] sm:$0xff]  }
  0x5d   :  { %1163 = vmatprep.subr.bf16.mxu0 %v1338_v20  ;;  %573 = vmatprep.mubr.bf16.mxu0 %v148_v45  ;;  %v150_v50 = vpack.c.bf16 %v132_v46, %v132_v46  ;;  %v1373_v42 = vld [vmem:[#allocation8 + $0x8] sm:$0xff]   ;;  %v1376_v45 = vld [vmem:[#allocation10 + $0x30] sm:$0xff]  }
  0x5e   :  { %1184 = vmatpush3.bf16.msra.mxu1 %v1337_v19  ;;  %v1377_v46 = vld [vmem:[#allocation10 + $0x28] sm:$0xff]  }
  0x5f   :  { %1185 = vmatprep.subr.bf16.mxu1 %v1340_v25  ;;  %613 = vmatprep.mubr.bf16.mxu1 %v150_v50 }
  0x60   :  { %1164 = vmatpush3.bf16.msra.mxu0 %v1339_v24 }
  0x61   :  { %1165 = vmatprep.subr.bf16.mxu0 %v1342_v27 }
  0x62   :  { %1186 = vmatpush3.bf16.msra.mxu1 %v1341_v26 }
  0x63   :  { %1187 = vmatprep.subr.bf16.mxu1 %v1344_v31 }
  0x64   :  { %1166 = vmatpush3.bf16.msra.mxu0 %v1343_v30 }
  0x65   :  { %1167 = vmatprep.subr.bf16.mxu0 %v1346_v33 }
  0x66   :  { %1188 = vmatpush3.bf16.msra.mxu1 %v1345_v32 }
  0x67   :  { %1189 = vmatprep.subr.bf16.mxu1 %v1348_v36  ;;  %v1554_v36 = vmov 0.0  }
  0x68   :  { %1168 = vmatpush3.bf16.msra.mxu0 %v1347_v35  ;;  %v1367_v35 = vld [vmem:[#allocation8 + $0x38] sm:$0xff]  }
  0x69   :  { %1197 = vmatprep.subr.bf16.mxu0 %v1350_v41  ;;  %v1372_v41 = vld [vmem:[#allocation8 + $0x10] sm:$0xff]  }
  0x6a   :  { %1190 = vmatpush3.bf16.msra.mxu1 %v1349_v39  ;;  %v1370_v39 = vld [vmem:[#allocation8 + $0x20] sm:$0xff]  }
  0x6b   :  { %574 = vmatmul.mubr.bf16.vlgmr.msra.gmra.mxu0 %v147_v44  ;;  %1246 = vmatprep.subr.bf16.mxu1 %v1554_v36  ;;  %v1375_v44 = vld [vmem:[#allocation10 + $0x38] sm:$0xff]  }
  0x6c   :  { %1198 = vmatpush3.bf16.msra.mxu0 %v1352_v47  ;;  %653 = vmatprep.mubr.bf16.mxu0 %v152_v61  ;;  %v1378_v47 = vld [vmem:[#allocation10 + $0x20] sm:$0xff]   ;;  %v1125_v61 = vld [vmem:[%s1690_s6 + $0x2] ss:$0 sm:$0xff] }
  0x6d   :  { %614 = vmatmul.mubr.bf16.vlgmr.msra.gmra.mxu1 %v149_v48  ;;  %1199 = vmatprep.subr.bf16.mxu0 %v1353_v49  ;;  %v1379_v48 = vld [vmem:[#allocation10 + $0x18] sm:$0xff]   ;;  %v1380_v49 = vld [vmem:[#allocation10 + $0x10] sm:$0xff]  }
  0x6e   :  { %1247 = vmatpush3.bf16.msra.mxu1 %v1367_v35  ;;  %1262 = vmatprep.mubr.msk.bf16.mxu1 %vm1555_vm3, %v1554_v36 }
  0x6f   :  { %1248 = vmatprep.subr.bf16.mxu1 %v1554_v36 }
  0x70   :  { %1200 = vmatpush3.bf16.msra.mxu0 %v1354_v51 }
  0x71   :  { %1201 = vmatprep.subr.bf16.mxu0 %v1355_v52 }
  0x72   :  { %1249 = vmatpush3.bf16.msra.mxu1 %v1368_v37 }
  0x73   :  { %1250 = vmatprep.subr.bf16.mxu1 %v1554_v36 }
  0x74   :  { %1202 = vmatpush3.bf16.msra.mxu0 %v1356_v53 }
  0x75   :  { %1203 = vmatprep.subr.bf16.mxu0 %v1357_v54 }
  0x76   :  { %1251 = vmatpush3.bf16.msra.mxu1 %v1369_v38 }
  0x77   :  { %1252 = vmatprep.subr.bf16.mxu1 %v1554_v36 }
  0x78   :  { %1204 = vmatpush3.bf16.msra.mxu0 %v1358_v55 }
  0x79   :  { %1205 = vmatprep.subr.bf16.mxu0 %v1359_v56 }
  0x7a   :  { %1253 = vmatpush3.bf16.msra.mxu1 %v1370_v39 }
  0x7b   :  { %1254 = vmatprep.subr.bf16.mxu1 %v1554_v36 }
  0x7c   :  { %1206 = vmatpush3.bf16.msra.mxu0 %v1360_v59  ;;  %v1124_v59 = vld [vmem:[%s1690_s6 + $0x1] ss:$0 sm:$0xff] }
  0x7d   :  { %1207 = vmatprep.subr.bf16.mxu0 %v1361_v60 }
  0x7e   :  { %1255 = vmatpush3.bf16.msra.mxu1 %v1371_v40 }
  0x7f   :  { %1256 = vmatprep.subr.bf16.mxu1 %v1554_v36 }
  0x80   :  { %1208 = vmatpush3.bf16.msra.mxu0 %v1362_v62 }
  0x81   :  { %1209 = vmatprep.subr.bf16.mxu0 %v1363_v63 }
  0x82   :  { %1257 = vmatpush3.bf16.msra.mxu1 %v1372_v41 }
  0x83   :  { %1258 = vmatprep.subr.bf16.mxu1 %v1554_v36 }
  0x84   :  { %1210 = vmatpush3.bf16.msra.mxu0 %v1364_v0 }
  0x85   :  { %1211 = vmatprep.subr.bf16.mxu0 %v1365_v1  ;;  %v1381_v1 = vld [vmem:[#allocation10 + $0x8] sm:$0xff]  }
  0x86   :  { %1259 = vmatpush3.bf16.msra.mxu1 %v1373_v42 }
  0x87   :  { %1260 = vmatprep.subr.bf16.mxu1 %v1554_v36 }
  0x88   :  { %1212 = vmatpush3.bf16.msra.mxu0 %v1366_v2  ;;  %v1382_v2 = vld [vmem:[#allocation10] sm:$0xff]  }
  0x89   :  { %1266 = vmatprep.subr.bf16.mxu0 %v1554_v36 }
  0x8a   :  { %1261 = vmatpush3.bf16.msra.mxu1 %v1374_v43 }
  0x8b   :  { %654 = vmatmul.mubr.bf16.vlgmr.msra.gmra.mxu0 %v151_v3  ;;  %1286 = vmatprep.subr.bf16.mxu1 %v1554_v36  ;;  %v1126_v3 = vld [vmem:[%s1690_s6 + $0x3] ss:$0 sm:$0xff] }
  0x8c   :  { %1282 = vmatprep.mubr.msk.bf16.mxu0 %vm1555_vm3, %v1554_v36  ;;  %1267 = vmatpush3.bf16.msra.mxu0 %v1375_v44 }
  0x8d   :  { %1268 = vmatprep.subr.bf16.mxu0 %v1554_v36 }
  0x90   :  { %1269 = vmatpush3.bf16.msra.mxu0 %v1376_v45  ;;  %v1144_v45 = vld [vmem:[%s1690_s6 + $0x5] ss:$0 sm:$0xff] }
  0x91   :  { %1270 = vmatprep.subr.bf16.mxu0 %v1554_v36 }
  0x94   :  { %1271 = vmatpush3.bf16.msra.mxu0 %v1377_v46 }
  0x95   :  { %1272 = vmatprep.subr.bf16.mxu0 %v1554_v36 }
  0x98   :  { %1273 = vmatpush3.bf16.msra.mxu0 %v1378_v47 }
  0x99   :  { %1274 = vmatprep.subr.bf16.mxu0 %v1554_v36 }
  0x9c   :  { %1275 = vmatpush3.bf16.msra.mxu0 %v1379_v48 }
  0x9d   :  { %1276 = vmatprep.subr.bf16.mxu0 %v1554_v36 }
  0xa0   :  { %1277 = vmatpush3.bf16.msra.mxu0 %v1380_v49 }
  0xa1   :  { %1278 = vmatprep.subr.bf16.mxu0 %v1554_v36 }
  0xa4   :  { %1279 = vmatpush3.bf16.msra.mxu0 %v1381_v1 }
  0xa5   :  { %1280 = vmatprep.subr.bf16.mxu0 %v1554_v36 }
  0xa8   :  { %1281 = vmatpush3.bf16.msra.mxu0 %v1382_v2 }
 0x12b   :  { %v1169_v4 = vpop.f32.mrf.mxu0 }
 0x12d   :  { %v1170_v5 = vpop.f32.mrf.mxu0  ;;  %v1191_v6 = vpop.f32.mrf.mxu1 }
 0x12e   :  { %v1171_v12 = vadd.f32 %v1170_v5, %v1169_v4 }
 0x12f   :  { %v1172_v7 = vpop.f32.mrf.mxu0  ;;  %v1192_v8 = vpop.f32.mrf.mxu1 }
 0x130   :  { %v576_v14 = vadd.f32 %v1171_v12, %v1075_v13  ;;  %v1193_v15 = vadd.f32 %v1192_v8, %v1191_v6 }
 0x131   :  { %v1173_v9 = vpop.f32.mrf.mxu0  ;;  %v1194_v10 = vpop.f32.mrf.mxu1 }
 0x132   :  { %v616_v18 = vadd.f32 %v1193_v15, %v576_v14 }
 0x133   :  { %v1195_v11 = vpop.f32.mrf.mxu1 }
 0x134   :  { %v1135_v11 = vld [vmem:[%s1690_s6 + $0x4] ss:$0 sm:$0xff] }
 0x14b   :  { %v1213_v16 = vpop.f32.mrf.mxu0 }
 0x14d   :  { %v1214_v17 = vpop.f32.mrf.mxu0 }
 0x14e   :  { %v1215_v19 = vadd.f32 %v1214_v17, %v1213_v16 }
 0x14f   :  { %v1216_v20 = vpop.f32.mrf.mxu0 }
 0x150   :  { %v656_v21 = vadd.f32 %v1215_v19, %v616_v18  ;;  %v1383_v19 = vld [vmem:[#allocation11 + $0x38] sm:$0xff]   ;;  %v1384_v20 = vld [vmem:[#allocation11 + $0x30] sm:$0xff]  }
 0x151   :  { %v1217_v22 = vpop.f32.mrf.mxu0 }
 0x152   :  { %v664_v24 = vrot.slane %v656_v21, 6  ;;  %v667_v25 = vrot.slane %v656_v21, 4  ;;  %v670_v26 = vrot.slane %v656_v21, 2  ;;  %v662_v27 = vadd.f32 %v661_v23, %v656_v21  ;;  %v1385_v21 = vld [vmem:[#allocation11 + $0x28] sm:$0xff]   ;;  %v1386_v22 = vld [vmem:[#allocation11 + $0x20] sm:$0xff]  }
 0x154   :  { %v666_v28 = vadd.f32 %v664_v24, %v661_v23  ;;  %v669_v29 = vadd.f32 %v667_v25, %v661_v23  ;;  %v672_v30 = vadd.f32 %v670_v26, %v661_v23  ;;  %v1387_v23 = vld [vmem:[#allocation11 + $0x18] sm:$0xff]   ;;  %v1388_v24 = vld [vmem:[#allocation11 + $0x10] sm:$0xff]   ;;  %v1389_v25 = vld [vmem:[#allocation11 + $0x8] sm:$0xff]  }
 0x155   :  { %v1390_v26 = vld [vmem:[#allocation11] sm:$0xff]  }
 0x156   :  { %v674_v31 = vsel %vm673_vm0, %v662_v27, %v666_v28 }
 0x157   :  { %v676_v32 = vsel %vm675_vm1, %v674_v31, %v669_v29 }
 0x158   :  { %v1630_v33 = vsel %vm677_vm2, %v676_v32, %v672_v30 }
 0x159   :  { %679 = vadd.xlane.f32.xlu0 %v1630_v33  ;;  %v682_v34 = vmul.f32 %v1630_v33, %v1630_v33 }
 0x15d   :  { %683 = vadd.xlane.f32.xlu0 %v682_v34 }
 0x1e2   :  { %v680_v50 = vpop.xlane.xlu0 %679 }
 0x1e3   :  { %v681_v51 = vmul.f32 0.03125, %v680_v50 }
 0x1e5   :  { %v686_v53 = vmul.f32 %v681_v51, %v681_v51  ;;  %v688_v57 = vsub.f32 %v1630_v33, %v681_v51 }
 0x1e6   :  { %v684_v52 = vpop.xlane.xlu0 %683 }
 0x1e7   :  { %v685_v54 = vmul.f32 0.03125, %v684_v52 }
 0x1e9   :  { %v687_v55 = vsub.f32 %v685_v54, %v686_v53 }
 0x1eb   :  { %v689_v56 = vadd.f32 1e-05, %v687_v55 }
 0x1ed   :  { %1391 = vrsqrt.f32 %v689_v56 }
 0x1fa   :  { %v1392_v58 = vpop.eup %1391 }
 0x1fb   :  { %v691_v60 = vmul.f32 %v1392_v58, %v688_v57 }
 0x1fd   :  { %v696_v62 = vmul.f32 %v1124_v59, %v691_v60 }
 0x1ff   :  { %v701_v63 = vadd.f32 %v1125_v61, %v696_v62 }
 0x201   :  { %v702_v0 = vpack.c.bf16 %v701_v63, %v701_v63 }
 0x203   :  { %1263 = vmatmul.mubr.bf16.vlgmr.msra.gmra.mxu1 %v702_v0 }
 0x204   :  { %1302 = vmatprep.mubr.msk.bf16.mxu1 %vm1555_vm3, %v1554_v36  ;;  %1287 = vmatpush3.bf16.msra.mxu1 %v1383_v19 }
 0x205   :  { %1288 = vmatprep.subr.bf16.mxu1 %v1554_v36 }
 0x208   :  { %1289 = vmatpush3.bf16.msra.mxu1 %v1384_v20 }
 0x209   :  { %1290 = vmatprep.subr.bf16.mxu1 %v1554_v36 }
 0x20c   :  { %1291 = vmatpush3.bf16.msra.mxu1 %v1385_v21 }
 0x20d   :  { %1292 = vmatprep.subr.bf16.mxu1 %v1554_v36 }
 0x210   :  { %1293 = vmatpush3.bf16.msra.mxu1 %v1386_v22 }
 0x211   :  { %1294 = vmatprep.subr.bf16.mxu1 %v1554_v36 }
 0x214   :  { %1295 = vmatpush3.bf16.msra.mxu1 %v1387_v23 }
 0x215   :  { %1296 = vmatprep.subr.bf16.mxu1 %v1554_v36 }
 0x218   :  { %1297 = vmatpush3.bf16.msra.mxu1 %v1388_v24 }
 0x219   :  { %1298 = vmatprep.subr.bf16.mxu1 %v1554_v36 }
 0x21c   :  { %1299 = vmatpush3.bf16.msra.mxu1 %v1389_v25 }
 0x21d   :  { %1300 = vmatprep.subr.bf16.mxu1 %v1554_v36 }
 0x220   :  { %1301 = vmatpush3.bf16.msra.mxu1 %v1390_v26 }
 0x2c3   :  { %v805_v4 = vpop.f32.mrf.mxu1 }
 0x2c4   :  { %v806_v5 = vadd.f32 %v1126_v3, %v805_v4 }
 0x2c5   :  { %v1264_v6 = vpop.f32.mrf.mxu1 }
 0x2c6   :  { %v811_v7 = vmax.f32 %v806_v5, 0.0 }
 0x2c7   :  { %v808_v8 = vpop.f32.mrf.mxu1 }
 0x2c8   :  { %v812_v9 = vpack.c.bf16 %v811_v7, %v811_v7 }
 0x2c9   :  { %v1265_v10 = vpop.f32.mrf.mxu1 }
 0x2ca   :  { %1283 = vmatmul.mubr.bf16.vlgmr.msra.gmra.mxu0 %v812_v9 }
 0x38a   :  { %v915_v12 = vpop.f32.mrf.mxu0 }
 0x38b   :  { %v916_v13 = vadd.f32 %v1135_v11, %v915_v12 }
 0x38c   :  { %v1284_v14 = vpop.f32.mrf.mxu0 }
 0x38d   :  { %v921_v15 = vadd.f32 %v916_v13, %v701_v63 }
 0x38e   :  { %v918_v16 = vpop.f32.mrf.mxu0 }
 0x38f   :  { %922 = vadd.xlane.f32.xlu1 %v921_v15  ;;  %v925_v18 = vmul.f32 %v921_v15, %v921_v15 }
 0x390   :  { %v1285_v17 = vpop.f32.mrf.mxu0 }
 0x393   :  { %926 = vadd.xlane.f32.xlu1 %v925_v18 }
 0x418   :  { %v923_v27 = vpop.xlane.xlu1 %922 }
 0x419   :  { %v924_v28 = vmul.f32 0.03125, %v923_v27 }
 0x41b   :  { %v929_v30 = vmul.f32 %v924_v28, %v924_v28  ;;  %v931_v34 = vsub.f32 %v921_v15, %v924_v28 }
 0x41c   :  { %v927_v29 = vpop.xlane.xlu1 %926 }
 0x41d   :  { %v928_v31 = vmul.f32 0.03125, %v927_v29 }
 0x41f   :  { %v930_v32 = vsub.f32 %v928_v31, %v929_v30 }
 0x421   :  { %v932_v33 = vadd.f32 1e-05, %v930_v32 }
 0x423   :  { %1393 = vrsqrt.f32 %v932_v33 }
 0x430   :  { %v1394_v35 = vpop.eup %1393 }
 0x431   :  { %v934_v37 = vmul.f32 %v1394_v35, %v931_v34 }
 0x433   :  { %v936_v38 = vrot.slane %v934_v37, 2  ;;  %v939_v40 = vrot.slane %v934_v37, 4  ;;  %v942_v42 = vrot.slane %v934_v37, 6 }
 0x435   :  { %v938_v39 = vadd.f32 %v936_v38, %v934_v37 }
 0x437   :  { %v941_v41 = vadd.f32 %v939_v40, %v938_v39 }
 0x439   :  { %v944_v43 = vadd.f32 %v942_v42, %v941_v41 }
 0x43b   :  { %v945_v44 = vmul.f32 0.25, %v944_v43 }
 0x43d   :  { %v946_v36 = vpack.c.bf16 %v945_v44, %v945_v44 }
 0x43f   :  { %1303 = vmatmul.mubr.bf16.vlgmr.msra.gmra.mxu1 %v946_v36 }
 0x4ff   :  { %v1049_v46 = vpop.f32.mrf.mxu1 }
 0x500   :  { %v1050_v47 = vadd.f32 %v1144_v45, %v1049_v46 }
 0x501   :  { %v1304_v48 = vpop.f32.mrf.mxu1 }
 0x502   :  { %1055 = vst [vmem:[#allocation13] sm:$0x3] %v1050_v47 }
 0x503   :  { %v1052_v49 = vpop.f32.mrf.mxu1 }
 0x504   :  { %1526 = shalt.err (!%p1523_p6)
}
 0x505   :  { %1065 = dma.vmem_to_hbm [thread:$0]  %s1063_s16, 32, %s1691_s7, [#allocation4]   ;;  %v1305_v50 = vpop.f32.mrf.mxu1 }
 0x506   :  { %1543 = dma.done.wait [#allocation4], 32  }
 0x507   :  { %1544 = vsyncadd [#allocation4], 4294967264 }
 0x508   :  { %1069 = vsyncpa [#allocation3], 1 }
 0x509   :  { %1070 = vsyncpa [#allocation6], 1 }
 0x50a   :  { %1071 = vsyncpa [#allocation9], 1 }
 0x50b   :  { %1072 = vsyncpa [#allocation12], 1 }
 0x50c   :  { %1073 = vsyncpa [#allocation4], 1 }

</bundles_post_ra>
